<compile_context>
chip_gen: v5e
topology: v5e:2x2
jax: 0.10.0
libtpu: 0.0.40
codegen_flags: <defaults>
</compile_context>

<pallas_src>
import jax
import jax.numpy as jnp
import numpy as np
from jax.experimental import pallas as pl
from jax.experimental.pallas import tpu as pltpu

INPUT_DIM = 16
HIDDEN = 32
FOUR_H = 4 * HIDDEN          # 128 -> one full lane tile
FUTURE_DIM = 20
FC1_DIM = 128

PAD_B = 8                    # batch padded to one sublane tile
PAD_D = 32                   # lane width shared by x rows and future rows

# Row offsets inside the packed weight slab. Every section start and length
# is a multiple of 8 sublanes so all in-kernel slices are tile-aligned.
_OFF_WIH = 0                                  # 32 rows ((32, 128); rows 0:16 real)
_OFF_WHH = _OFF_WIH + PAD_D                   # 32  -> (32, 128)
_OFF_BIAS = _OFF_WHH + HIDDEN                 # 64  -> (1, 128), padded to 8
_OFF_W1H = _OFF_BIAS + 8                      # 72  -> (32, 128)
_OFF_W1F = _OFF_W1H + HIDDEN                  # 104 -> (32, 128; rows 0:20 real)
_OFF_B1 = _OFF_W1F + PAD_D                    # 136 -> (1, 128), padded to 8
_OFF_W2 = _OFF_B1 + 8                         # 144 -> (1, 128), padded to 8
_OFF_B2 = _OFF_W2 + 8                         # 152 -> b2 in lane 0, padded to 8
_SLAB_ROWS = _OFF_B2 + 8                      # 160


def stateless_rnn_kernel(buf_ref, slab_ref, out_ref):
    """buf_ref: (S*8 + 8, 32) -- rows 0:S*8 = time-major-flattened x (lanes
    0:16 real), rows S*8:S*8+8 = future (lanes 0:20 real).
    slab_ref: (_SLAB_ROWS, 128) packed weights. out_ref: (8, 1)."""
    pb = out_ref.shape[0]                       # padded batch = 8
    seq_len = (buf_ref.shape[0] - pb) // pb
    hidden = HIDDEN

    wih = slab_ref[_OFF_WIH:_OFF_WIH + PAD_D, :]        # (32, 4H), i/f/o cols pre-scaled by 0.5
    whh = slab_ref[_OFF_WHH:_OFF_WHH + HIDDEN, :]       # (H, 4H),  i/f/o cols pre-scaled by 0.5
    bias = slab_ref[_OFF_BIAS:_OFF_BIAS + 1, :]         # (1, 4H),  i/f/o cols pre-scaled by 0.5
    w1h = slab_ref[_OFF_W1H:_OFF_W1H + HIDDEN, :]       # (H, 128)
    w1f = slab_ref[_OFF_W1F:_OFF_W1F + PAD_D, :]        # (32, 128; rows 0:20 real)
    b1 = slab_ref[_OFF_B1:_OFF_B1 + 1, :]               # (1, 128)
    w2_row = slab_ref[_OFF_W2:_OFF_W2 + 1, :]           # (1, 128)
    b2 = slab_ref[_OFF_B2:_OFF_B2 + 1, 0:1]             # (1, 1)

    x_flat = buf_ref[0:seq_len * pb, :]                 # (S*8, 32)
    fut = buf_ref[seq_len * pb:seq_len * pb + pb, :]    # (8, 32)

    # Input projection + combined (pre-scaled) LSTM bias hoisted off the
    # serial recurrence: one (S*8, 32) x (32, 4H) MXU call + one bias add.
    gx = jnp.dot(x_flat, wih, preferred_element_type=jnp.float32) + bias

    h = jnp.zeros((pb, hidden), jnp.float32)
    c = jnp.zeros((pb, hidden), jnp.float32)

    # Fully unrolled recurrence (seq_len static). PyTorch gate order i,f,g,o.
    # Because the i/f/o columns were pre-scaled by 0.5, sigma(z) = 0.5*tanh(z/2)+0.5
    # comes out of the SAME tanh pass that produces g = tanh(z_g): exactly one
    # transcendental over the (8, 128) gate tile per step (+ tanh(c)).
    for t in range(seq_len):
        gates = gx[t * pb:(t + 1) * pb, :] + jnp.dot(
            h, whh, preferred_element_type=jnp.float32)          # (8, 4H)
        tg = jnp.tanh(gates)
        i = 0.5 * tg[:, 0 * hidden:1 * hidden] + 0.5
        f = 0.5 * tg[:, 1 * hidden:2 * hidden] + 0.5
        g = tg[:, 2 * hidden:3 * hidden]
        o = 0.5 * tg[:, 3 * hidden:4 * hidden] + 0.5
        c = f * c + i * g
        h = o * jnp.tanh(c)

    # fc1 on concat([h_last, future], dim=1) as a split matmul (no in-kernel
    # lane concatenation of width 32 + 20).
    z = (jnp.dot(h, w1h, preferred_element_type=jnp.float32)
         + jnp.dot(fut, w1f, preferred_element_type=jnp.float32)
         + b1)                                                   # (8, 128)
    z = jnp.maximum(z, 0.0)                                      # ReLU
    # TODO(synk): nn.Dropout() is treated as identity (eval-mode semantics).
    # fc2 (out_features=1) as multiply + lane reduction (no N=1 MXU matmul).
    out_ref[...] = jnp.sum(z * w2_row, axis=-1, keepdims=True) + b2


def init_params(key, input_dim=INPUT_DIM, hidden=HIDDEN):
    ks = jax.random.split(key, 8)
    s = 1.0 / float(np.sqrt(hidden))
    # LSTM params (PyTorch layout: weight_ih (4H, D), weight_hh (4H, H)).
    wih = jax.random.uniform(ks[0], (4 * hidden, input_dim), jnp.float32, -s, s)
    whh = jax.random.uniform(ks[1], (4 * hidden, hidden), jnp.float32, -s, s)
    b_ih = jax.random.uniform(ks[2], (4 * hidden,), jnp.float32, -s, s)
    b_hh = jax.random.uniform(ks[3], (4 * hidden,), jnp.float32, -s, s)
    # fc1: (128, hidden + 20), fc2: (1, 128)
    s1 = 1.0 / float(np.sqrt(hidden + FUTURE_DIM))
    w1 = jax.random.uniform(ks[4], (FC1_DIM, hidden + FUTURE_DIM), jnp.float32, -s1, s1)
    b1 = jax.random.uniform(ks[5], (FC1_DIM,), jnp.float32, -s1, s1)
    s2 = 1.0 / float(np.sqrt(FC1_DIM))
    w2 = jax.random.uniform(ks[6], (1, FC1_DIM), jnp.float32, -s2, s2)
    b2 = jax.random.uniform(ks[7], (1,), jnp.float32, -s2, s2)

    # Column scale for the tanh-derived sigmoid: i/f/o gate columns * 0.5,
    # g columns * 1.0 (sigma(z) = 0.5 * tanh(z/2) + 0.5, exact identity).
    gate_scale = jnp.concatenate([
        jnp.full((hidden,), 0.5, jnp.float32),
        jnp.full((hidden,), 0.5, jnp.float32),
        jnp.ones((hidden,), jnp.float32),
        jnp.full((hidden,), 0.5, jnp.float32)])

    # Pack every weight/bias (pre-transposed for right-multiplication) into a
    # single (160, 128) f32 slab -> one HBM->VMEM DMA instead of eight.
    slab = jnp.zeros((_SLAB_ROWS, FOUR_H), jnp.float32)
    slab = slab.at[_OFF_WIH:_OFF_WIH + input_dim, :].set(wih.T * gate_scale)
    slab = slab.at[_OFF_WHH:_OFF_WHH + hidden, :].set(whh.T * gate_scale)
    slab = slab.at[_OFF_BIAS, :].set((b_ih + b_hh) * gate_scale)
    slab = slab.at[_OFF_W1H:_OFF_W1H + hidden, :].set(w1[:, :hidden].T)
    slab = slab.at[_OFF_W1F:_OFF_W1F + FUTURE_DIM, :].set(w1[:, hidden:].T)
    slab = slab.at[_OFF_B1, :].set(b1)
    slab = slab.at[_OFF_W2, :].set(w2.reshape(FC1_DIM))
    slab = slab.at[_OFF_B2, 0].set(b2[0])

    return {
        "slab": slab,
        # raw copies kept for the pure-JAX reference
        "_raw": (wih, whh, b_ih, b_hh, w1, b1, w2, b2),
    }


def stateless_rnn_forward(x, future, params):
    """x: (batch, seq, input_dim), future: (batch, 20) -> (batch, 1)."""
    batch, seq, input_dim = x.shape
    assert batch <= PAD_B and input_dim <= PAD_D and FUTURE_DIM <= PAD_D

    # Time-major, pad batch to 8 sublanes and lanes to 32, flatten (seq, 8),
    # then append the (padded) future rows -> one input buffer, 2 input DMAs.
    x_tm = jnp.transpose(x, (1, 0, 2)).astype(jnp.float32)        # (S, B, D)
    x_tm = jnp.pad(x_tm, ((0, 0), (0, PAD_B - batch), (0, PAD_D - input_dim)))
    x2d = x_tm.reshape(seq * PAD_B, PAD_D)                        # (S*8, 32)
    fut = jnp.pad(future.astype(jnp.float32),
                  ((0, PAD_B - batch), (0, PAD_D - FUTURE_DIM)))  # (8, 32)
    buf = jnp.concatenate([x2d, fut], axis=0)                     # (S*8+8, 32)

    vmem = pl.BlockSpec(memory_space=pltpu.MemorySpace.VMEM)
    out = pl.pallas_call(
        stateless_rnn_kernel,
        out_shape=jax.ShapeDtypeStruct((PAD_B, 1), jnp.float32),
        in_specs=[vmem, vmem],
        out_specs=vmem,
    )(buf, params["slab"])
    return out[:batch]                  # drop padded batch rows


def reference_forward(x, future, params):
    """Pure-JAX reference mirroring the PyTorch forward (eval-mode dropout)."""
    wih, whh, b_ih, b_hh, w1, b1, w2, b2 = params["_raw"]
    hidden = whh.shape[1]
    x_tm = jnp.transpose(x, (1, 0, 2)).astype(jnp.float32)
    batch = x.shape[0]
    h = jnp.zeros((batch, hidden), jnp.float32)
    c = jnp.zeros((batch, hidden), jnp.float32)

    def step(carry, x_t):
        h, c = carry
        gates = x_t @ wih.T + h @ whh.T + b_ih + b_hh
        i = jax.nn.sigmoid(gates[:, 0 * hidden:1 * hidden])
        f = jax.nn.sigmoid(gates[:, 1 * hidden:2 * hidden])
        g = jnp.tanh(gates[:, 2 * hidden:3 * hidden])
        o = jax.nn.sigmoid(gates[:, 3 * hidden:4 * hidden])
        c = f * c + i * g
        h = o * jnp.tanh(c)
        return (h, c), None

    (h, _), _ = jax.lax.scan(step, (h, c), x_tm)
    feat = jnp.concatenate([h, future.astype(jnp.float32)], axis=1)
    z = jnp.maximum(feat @ w1.T + b1, 0.0)
    return z @ w2.T + b2


if __name__ == "__main__":
    key = jax.random.PRNGKey(0)
    k_x, k_f, k_p = jax.random.split(key, 3)

    batch, seq = 4, 8
    x = jax.random.normal(k_x, (batch, seq, INPUT_DIM), jnp.float32)
    future = jax.random.normal(k_f, (batch, FUTURE_DIM), jnp.float32)
    params = init_params(k_p)

    out = stateless_rnn_forward(x, future, params)
    out = jax.block_until_ready(out)

    ref = jax.block_until_ready(reference_forward(x, future, params))
    np.testing.assert_allclose(np.asarray(out), np.asarray(ref),
                               rtol=1e-5, atol=1e-5)
    assert out.shape == (batch, 1)
    print("KERNEL_OK")
</pallas_src>

<mosaic_0001>
module attributes {stable_mosaic.version = 11 : i64} {
  func.func @stateless_rnn_kernel(%arg0: memref<72x32xf32, #tpu.memory_space<vmem>>, %arg1: memref<160x128xf32, #tpu.memory_space<vmem>>, %arg2: memref<8x1xf32, #tpu.memory_space<vmem>>) attributes {dimension_semantics = [], scalar_prefetch = 0 : i64, scratch_operands = 0 : i64, tpu.core_type = #tpu.core_type<tc>} {
    %c0 = arith.constant 0 : index
    %c0_0 = arith.constant 0 : index
    %0 = vector.load %arg1[%c0, %c0_0] : memref<160x128xf32, #tpu.memory_space<vmem>>, vector<32x128xf32>
    %c32 = arith.constant 32 : index
    %c0_1 = arith.constant 0 : index
    %1 = vector.load %arg1[%c32, %c0_1] : memref<160x128xf32, #tpu.memory_space<vmem>>, vector<32x128xf32>
    %c64 = arith.constant 64 : index
    %c0_2 = arith.constant 0 : index
    %2 = vector.load %arg1[%c64, %c0_2] : memref<160x128xf32, #tpu.memory_space<vmem>>, vector<1x128xf32>
    %c72 = arith.constant 72 : index
    %c0_3 = arith.constant 0 : index
    %3 = vector.load %arg1[%c72, %c0_3] : memref<160x128xf32, #tpu.memory_space<vmem>>, vector<32x128xf32>
    %c104 = arith.constant 104 : index
    %c0_4 = arith.constant 0 : index
    %4 = vector.load %arg1[%c104, %c0_4] : memref<160x128xf32, #tpu.memory_space<vmem>>, vector<32x128xf32>
    %c136 = arith.constant 136 : index
    %c0_5 = arith.constant 0 : index
    %5 = vector.load %arg1[%c136, %c0_5] : memref<160x128xf32, #tpu.memory_space<vmem>>, vector<1x128xf32>
    %c144 = arith.constant 144 : index
    %c0_6 = arith.constant 0 : index
    %6 = vector.load %arg1[%c144, %c0_6] : memref<160x128xf32, #tpu.memory_space<vmem>>, vector<1x128xf32>
    %c152 = arith.constant 152 : index
    %c0_7 = arith.constant 0 : index
    %7 = vector.load %arg1[%c152, %c0_7] : memref<160x128xf32, #tpu.memory_space<vmem>>, vector<1x1xf32>
    %c0_8 = arith.constant 0 : index
    %c0_9 = arith.constant 0 : index
    %8 = vector.load %arg0[%c0_8, %c0_9] : memref<72x32xf32, #tpu.memory_space<vmem>>, vector<64x32xf32>
    %c64_10 = arith.constant 64 : index
    %c0_11 = arith.constant 0 : index
    %9 = vector.load %arg0[%c64_10, %c0_11] : memref<72x32xf32, #tpu.memory_space<vmem>>, vector<8x32xf32>
    %cst = arith.constant dense<0.000000e+00> : vector<64x128xf32>
    %10 = tpu.matmul %8, %0, %cst {dimension_numbers = #tpu.dot_dimension_numbers<[1], [0], [0], [1], [0, 0, 1, 1], [], []>} : vector<64x32xf32>, vector<32x128xf32>, vector<64x128xf32> -> vector<64x128xf32>
    %11 = vector.broadcast %2 : vector<1x128xf32> to vector<64x128xf32>
    %12 = arith.addf %10, %11 : vector<64x128xf32>
    %cst_12 = arith.constant 0.000000e+00 : f32
    %13 = vector.broadcast %cst_12 : f32 to vector<8x32xf32>
    %cst_13 = arith.constant 0.000000e+00 : f32
    %14 = vector.broadcast %cst_13 : f32 to vector<8x32xf32>
    %15 = vector.extract_strided_slice %12 {offsets = [0, 0], sizes = [8, 128], strides = [1, 1]} : vector<64x128xf32> to vector<8x128xf32>
    %cst_14 = arith.constant dense<0.000000e+00> : vector<8x128xf32>
    %16 = tpu.matmul %13, %1, %cst_14 {dimension_numbers = #tpu.dot_dimension_numbers<[1], [0], [0], [1], [0, 0, 1, 1], [], []>} : vector<8x32xf32>, vector<32x128xf32>, vector<8x128xf32> -> vector<8x128xf32>
    %17 = arith.addf %15, %16 : vector<8x128xf32>
    %18 = math.tanh %17 : vector<8x128xf32>
    %19 = vector.extract_strided_slice %18 {offsets = [0, 0], sizes = [8, 32], strides = [1, 1]} : vector<8x128xf32> to vector<8x32xf32>
    %cst_15 = arith.constant 5.000000e-01 : f32
    %20 = vector.broadcast %cst_15 : f32 to vector<8x32xf32>
    %21 = arith.mulf %20, %19 : vector<8x32xf32>
    %cst_16 = arith.constant 5.000000e-01 : f32
    %22 = vector.broadcast %cst_16 : f32 to vector<8x32xf32>
    %23 = arith.addf %21, %22 : vector<8x32xf32>
    %24 = vector.extract_strided_slice %18 {offsets = [0, 32], sizes = [8, 32], strides = [1, 1]} : vector<8x128xf32> to vector<8x32xf32>
    %cst_17 = arith.constant 5.000000e-01 : f32
    %25 = vector.broadcast %cst_17 : f32 to vector<8x32xf32>
    %26 = arith.mulf %25, %24 : vector<8x32xf32>
    %cst_18 = arith.constant 5.000000e-01 : f32
    %27 = vector.broadcast %cst_18 : f32 to vector<8x32xf32>
    %28 = arith.addf %26, %27 : vector<8x32xf32>
    %29 = vector.extract_strided_slice %18 {offsets = [0, 64], sizes = [8, 32], strides = [1, 1]} : vector<8x128xf32> to vector<8x32xf32>
    %30 = vector.extract_strided_slice %18 {offsets = [0, 96], sizes = [8, 32], strides = [1, 1]} : vector<8x128xf32> to vector<8x32xf32>
    %cst_19 = arith.constant 5.000000e-01 : f32
    %31 = vector.broadcast %cst_19 : f32 to vector<8x32xf32>
    %32 = arith.mulf %31, %30 : vector<8x32xf32>
    %cst_20 = arith.constant 5.000000e-01 : f32
    %33 = vector.broadcast %cst_20 : f32 to vector<8x32xf32>
    %34 = arith.addf %32, %33 : vector<8x32xf32>
    %35 = arith.mulf %28, %14 : vector<8x32xf32>
    %36 = arith.mulf %23, %29 : vector<8x32xf32>
    %37 = arith.addf %35, %36 : vector<8x32xf32>
    %38 = math.tanh %37 : vector<8x32xf32>
    %39 = arith.mulf %34, %38 : vector<8x32xf32>
    %40 = vector.extract_strided_slice %12 {offsets = [8, 0], sizes = [8, 128], strides = [1, 1]} : vector<64x128xf32> to vector<8x128xf32>
    %cst_21 = arith.constant dense<0.000000e+00> : vector<8x128xf32>
    %41 = tpu.matmul %39, %1, %cst_21 {dimension_numbers = #tpu.dot_dimension_numbers<[1], [0], [0], [1], [0, 0, 1, 1], [], []>} : vector<8x32xf32>, vector<32x128xf32>, vector<8x128xf32> -> vector<8x128xf32>
    %42 = arith.addf %40, %41 : vector<8x128xf32>
    %43 = math.tanh %42 : vector<8x128xf32>
    %44 = vector.extract_strided_slice %43 {offsets = [0, 0], sizes = [8, 32], strides = [1, 1]} : vector<8x128xf32> to vector<8x32xf32>
    %cst_22 = arith.constant 5.000000e-01 : f32
    %45 = vector.broadcast %cst_22 : f32 to vector<8x32xf32>
    %46 = arith.mulf %45, %44 : vector<8x32xf32>
    %cst_23 = arith.constant 5.000000e-01 : f32
    %47 = vector.broadcast %cst_23 : f32 to vector<8x32xf32>
    %48 = arith.addf %46, %47 : vector<8x32xf32>
    %49 = vector.extract_strided_slice %43 {offsets = [0, 32], sizes = [8, 32], strides = [1, 1]} : vector<8x128xf32> to vector<8x32xf32>
    %cst_24 = arith.constant 5.000000e-01 : f32
    %50 = vector.broadcast %cst_24 : f32 to vector<8x32xf32>
    %51 = arith.mulf %50, %49 : vector<8x32xf32>
    %cst_25 = arith.constant 5.000000e-01 : f32
    %52 = vector.broadcast %cst_25 : f32 to vector<8x32xf32>
    %53 = arith.addf %51, %52 : vector<8x32xf32>
    %54 = vector.extract_strided_slice %43 {offsets = [0, 64], sizes = [8, 32], strides = [1, 1]} : vector<8x128xf32> to vector<8x32xf32>
    %55 = vector.extract_strided_slice %43 {offsets = [0, 96], sizes = [8, 32], strides = [1, 1]} : vector<8x128xf32> to vector<8x32xf32>
    %cst_26 = arith.constant 5.000000e-01 : f32
    %56 = vector.broadcast %cst_26 : f32 to vector<8x32xf32>
    %57 = arith.mulf %56, %55 : vector<8x32xf32>
    %cst_27 = arith.constant 5.000000e-01 : f32
    %58 = vector.broadcast %cst_27 : f32 to vector<8x32xf32>
    %59 = arith.addf %57, %58 : vector<8x32xf32>
    %60 = arith.mulf %53, %37 : vector<8x32xf32>
    %61 = arith.mulf %48, %54 : vector<8x32xf32>
    %62 = arith.addf %60, %61 : vector<8x32xf32>
    %63 = math.tanh %62 : vector<8x32xf32>
    %64 = arith.mulf %59, %63 : vector<8x32xf32>
    %65 = vector.extract_strided_slice %12 {offsets = [16, 0], sizes = [8, 128], strides = [1, 1]} : vector<64x128xf32> to vector<8x128xf32>
    %cst_28 = arith.constant dense<0.000000e+00> : vector<8x128xf32>
    %66 = tpu.matmul %64, %1, %cst_28 {dimension_numbers = #tpu.dot_dimension_numbers<[1], [0], [0], [1], [0, 0, 1, 1], [], []>} : vector<8x32xf32>, vector<32x128xf32>, vector<8x128xf32> -> vector<8x128xf32>
    %67 = arith.addf %65, %66 : vector<8x128xf32>
    %68 = math.tanh %67 : vector<8x128xf32>
    %69 = vector.extract_strided_slice %68 {offsets = [0, 0], sizes = [8, 32], strides = [1, 1]} : vector<8x128xf32> to vector<8x32xf32>
    %cst_29 = arith.constant 5.000000e-01 : f32
    %70 = vector.broadcast %cst_29 : f32 to vector<8x32xf32>
    %71 = arith.mulf %70, %69 : vector<8x32xf32>
    %cst_30 = arith.constant 5.000000e-01 : f32
    %72 = vector.broadcast %cst_30 : f32 to vector<8x32xf32>
    %73 = arith.addf %71, %72 : vector<8x32xf32>
    %74 = vector.extract_strided_slice %68 {offsets = [0, 32], sizes = [8, 32], strides = [1, 1]} : vector<8x128xf32> to vector<8x32xf32>
    %cst_31 = arith.constant 5.000000e-01 : f32
    %75 = vector.broadcast %cst_31 : f32 to vector<8x32xf32>
    %76 = arith.mulf %75, %74 : vector<8x32xf32>
    %cst_32 = arith.constant 5.000000e-01 : f32
    %77 = vector.broadcast %cst_32 : f32 to vector<8x32xf32>
    %78 = arith.addf %76, %77 : vector<8x32xf32>
    %79 = vector.extract_strided_slice %68 {offsets = [0, 64], sizes = [8, 32], strides = [1, 1]} : vector<8x128xf32> to vector<8x32xf32>
    %80 = vector.extract_strided_slice %68 {offsets = [0, 96], sizes = [8, 32], strides = [1, 1]} : vector<8x128xf32> to vector<8x32xf32>
    %cst_33 = arith.constant 5.000000e-01 : f32
    %81 = vector.broadcast %cst_33 : f32 to vector<8x32xf32>
    %82 = arith.mulf %81, %80 : vector<8x32xf32>
    %cst_34 = arith.constant 5.000000e-01 : f32
    %83 = vector.broadcast %cst_34 : f32 to vector<8x32xf32>
    %84 = arith.addf %82, %83 : vector<8x32xf32>
    %85 = arith.mulf %78, %62 : vector<8x32xf32>
    %86 = arith.mulf %73, %79 : vector<8x32xf32>
    %87 = arith.addf %85, %86 : vector<8x32xf32>
    %88 = math.tanh %87 : vector<8x32xf32>
    %89 = arith.mulf %84, %88 : vector<8x32xf32>
    %90 = vector.extract_strided_slice %12 {offsets = [24, 0], sizes = [8, 128], strides = [1, 1]} : vector<64x128xf32> to vector<8x128xf32>
    %cst_35 = arith.constant dense<0.000000e+00> : vector<8x128xf32>
    %91 = tpu.matmul %89, %1, %cst_35 {dimension_numbers = #tpu.dot_dimension_numbers<[1], [0], [0], [1], [0, 0, 1, 1], [], []>} : vector<8x32xf32>, vector<32x128xf32>, vector<8x128xf32> -> vector<8x128xf32>
    %92 = arith.addf %90, %91 : vector<8x128xf32>
    %93 = math.tanh %92 : vector<8x128xf32>
    %94 = vector.extract_strided_slice %93 {offsets = [0, 0], sizes = [8, 32], strides = [1, 1]} : vector<8x128xf32> to vector<8x32xf32>
    %cst_36 = arith.constant 5.000000e-01 : f32
    %95 = vector.broadcast %cst_36 : f32 to vector<8x32xf32>
    %96 = arith.mulf %95, %94 : vector<8x32xf32>
    %cst_37 = arith.constant 5.000000e-01 : f32
    %97 = vector.broadcast %cst_37 : f32 to vector<8x32xf32>
    %98 = arith.addf %96, %97 : vector<8x32xf32>
    %99 = vector.extract_strided_slice %93 {offsets = [0, 32], sizes = [8, 32], strides = [1, 1]} : vector<8x128xf32> to vector<8x32xf32>
    %cst_38 = arith.constant 5.000000e-01 : f32
    %100 = vector.broadcast %cst_38 : f32 to vector<8x32xf32>
    %101 = arith.mulf %100, %99 : vector<8x32xf32>
    %cst_39 = arith.constant 5.000000e-01 : f32
    %102 = vector.broadcast %cst_39 : f32 to vector<8x32xf32>
    %103 = arith.addf %101, %102 : vector<8x32xf32>
    %104 = vector.extract_strided_slice %93 {offsets = [0, 64], sizes = [8, 32], strides = [1, 1]} : vector<8x128xf32> to vector<8x32xf32>
    %105 = vector.extract_strided_slice %93 {offsets = [0, 96], sizes = [8, 32], strides = [1, 1]} : vector<8x128xf32> to vector<8x32xf32>
    %cst_40 = arith.constant 5.000000e-01 : f32
    %106 = vector.broadcast %cst_40 : f32 to vector<8x32xf32>
    %107 = arith.mulf %106, %105 : vector<8x32xf32>
    %cst_41 = arith.constant 5.000000e-01 : f32
    %108 = vector.broadcast %cst_41 : f32 to vector<8x32xf32>
    %109 = arith.addf %107, %108 : vector<8x32xf32>
    %110 = arith.mulf %103, %87 : vector<8x32xf32>
    %111 = arith.mulf %98, %104 : vector<8x32xf32>
    %112 = arith.addf %110, %111 : vector<8x32xf32>
    %113 = math.tanh %112 : vector<8x32xf32>
    %114 = arith.mulf %109, %113 : vector<8x32xf32>
    %115 = vector.extract_strided_slice %12 {offsets = [32, 0], sizes = [8, 128], strides = [1, 1]} : vector<64x128xf32> to vector<8x128xf32>
    %cst_42 = arith.constant dense<0.000000e+00> : vector<8x128xf32>
    %116 = tpu.matmul %114, %1, %cst_42 {dimension_numbers = #tpu.dot_dimension_numbers<[1], [0], [0], [1], [0, 0, 1, 1], [], []>} : vector<8x32xf32>, vector<32x128xf32>, vector<8x128xf32> -> vector<8x128xf32>
    %117 = arith.addf %115, %116 : vector<8x128xf32>
    %118 = math.tanh %117 : vector<8x128xf32>
    %119 = vector.extract_strided_slice %118 {offsets = [0, 0], sizes = [8, 32], strides = [1, 1]} : vector<8x128xf32> to vector<8x32xf32>
    %cst_43 = arith.constant 5.000000e-01 : f32
    %120 = vector.broadcast %cst_43 : f32 to vector<8x32xf32>
    %121 = arith.mulf %120, %119 : vector<8x32xf32>
    %cst_44 = arith.constant 5.000000e-01 : f32
    %122 = vector.broadcast %cst_44 : f32 to vector<8x32xf32>
    %123 = arith.addf %121, %122 : vector<8x32xf32>
    %124 = vector.extract_strided_slice %118 {offsets = [0, 32], sizes = [8, 32], strides = [1, 1]} : vector<8x128xf32> to vector<8x32xf32>
    %cst_45 = arith.constant 5.000000e-01 : f32
    %125 = vector.broadcast %cst_45 : f32 to vector<8x32xf32>
    %126 = arith.mulf %125, %124 : vector<8x32xf32>
    %cst_46 = arith.constant 5.000000e-01 : f32
    %127 = vector.broadcast %cst_46 : f32 to vector<8x32xf32>
    %128 = arith.addf %126, %127 : vector<8x32xf32>
    %129 = vector.extract_strided_slice %118 {offsets = [0, 64], sizes = [8, 32], strides = [1, 1]} : vector<8x128xf32> to vector<8x32xf32>
    %130 = vector.extract_strided_slice %118 {offsets = [0, 96], sizes = [8, 32], strides = [1, 1]} : vector<8x128xf32> to vector<8x32xf32>
    %cst_47 = arith.constant 5.000000e-01 : f32
    %131 = vector.broadcast %cst_47 : f32 to vector<8x32xf32>
    %132 = arith.mulf %131, %130 : vector<8x32xf32>
    %cst_48 = arith.constant 5.000000e-01 : f32
    %133 = vector.broadcast %cst_48 : f32 to vector<8x32xf32>
    %134 = arith.addf %132, %133 : vector<8x32xf32>
    %135 = arith.mulf %128, %112 : vector<8x32xf32>
    %136 = arith.mulf %123, %129 : vector<8x32xf32>
    %137 = arith.addf %135, %136 : vector<8x32xf32>
    %138 = math.tanh %137 : vector<8x32xf32>
    %139 = arith.mulf %134, %138 : vector<8x32xf32>
    %140 = vector.extract_strided_slice %12 {offsets = [40, 0], sizes = [8, 128], strides = [1, 1]} : vector<64x128xf32> to vector<8x128xf32>
    %cst_49 = arith.constant dense<0.000000e+00> : vector<8x128xf32>
    %141 = tpu.matmul %139, %1, %cst_49 {dimension_numbers = #tpu.dot_dimension_numbers<[1], [0], [0], [1], [0, 0, 1, 1], [], []>} : vector<8x32xf32>, vector<32x128xf32>, vector<8x128xf32> -> vector<8x128xf32>
    %142 = arith.addf %140, %141 : vector<8x128xf32>
    %143 = math.tanh %142 : vector<8x128xf32>
    %144 = vector.extract_strided_slice %143 {offsets = [0, 0], sizes = [8, 32], strides = [1, 1]} : vector<8x128xf32> to vector<8x32xf32>
    %cst_50 = arith.constant 5.000000e-01 : f32
    %145 = vector.broadcast %cst_50 : f32 to vector<8x32xf32>
    %146 = arith.mulf %145, %144 : vector<8x32xf32>
    %cst_51 = arith.constant 5.000000e-01 : f32
    %147 = vector.broadcast %cst_51 : f32 to vector<8x32xf32>
    %148 = arith.addf %146, %147 : vector<8x32xf32>
    %149 = vector.extract_strided_slice %143 {offsets = [0, 32], sizes = [8, 32], strides = [1, 1]} : vector<8x128xf32> to vector<8x32xf32>
    %cst_52 = arith.constant 5.000000e-01 : f32
    %150 = vector.broadcast %cst_52 : f32 to vector<8x32xf32>
    %151 = arith.mulf %150, %149 : vector<8x32xf32>
    %cst_53 = arith.constant 5.000000e-01 : f32
    %152 = vector.broadcast %cst_53 : f32 to vector<8x32xf32>
    %153 = arith.addf %151, %152 : vector<8x32xf32>
    %154 = vector.extract_strided_slice %143 {offsets = [0, 64], sizes = [8, 32], strides = [1, 1]} : vector<8x128xf32> to vector<8x32xf32>
    %155 = vector.extract_strided_slice %143 {offsets = [0, 96], sizes = [8, 32], strides = [1, 1]} : vector<8x128xf32> to vector<8x32xf32>
    %cst_54 = arith.constant 5.000000e-01 : f32
    %156 = vector.broadcast %cst_54 : f32 to vector<8x32xf32>
    %157 = arith.mulf %156, %155 : vector<8x32xf32>
    %cst_55 = arith.constant 5.000000e-01 : f32
    %158 = vector.broadcast %cst_55 : f32 to vector<8x32xf32>
    %159 = arith.addf %157, %158 : vector<8x32xf32>
    %160 = arith.mulf %153, %137 : vector<8x32xf32>
    %161 = arith.mulf %148, %154 : vector<8x32xf32>
    %162 = arith.addf %160, %161 : vector<8x32xf32>
    %163 = math.tanh %162 : vector<8x32xf32>
    %164 = arith.mulf %159, %163 : vector<8x32xf32>
    %165 = vector.extract_strided_slice %12 {offsets = [48, 0], sizes = [8, 128], strides = [1, 1]} : vector<64x128xf32> to vector<8x128xf32>
    %cst_56 = arith.constant dense<0.000000e+00> : vector<8x128xf32>
    %166 = tpu.matmul %164, %1, %cst_56 {dimension_numbers = #tpu.dot_dimension_numbers<[1], [0], [0], [1], [0, 0, 1, 1], [], []>} : vector<8x32xf32>, vector<32x128xf32>, vector<8x128xf32> -> vector<8x128xf32>
    %167 = arith.addf %165, %166 : vector<8x128xf32>
    %168 = math.tanh %167 : vector<8x128xf32>
    %169 = vector.extract_strided_slice %168 {offsets = [0, 0], sizes = [8, 32], strides = [1, 1]} : vector<8x128xf32> to vector<8x32xf32>
    %cst_57 = arith.constant 5.000000e-01 : f32
    %170 = vector.broadcast %cst_57 : f32 to vector<8x32xf32>
    %171 = arith.mulf %170, %169 : vector<8x32xf32>
    %cst_58 = arith.constant 5.000000e-01 : f32
    %172 = vector.broadcast %cst_58 : f32 to vector<8x32xf32>
    %173 = arith.addf %171, %172 : vector<8x32xf32>
    %174 = vector.extract_strided_slice %168 {offsets = [0, 32], sizes = [8, 32], strides = [1, 1]} : vector<8x128xf32> to vector<8x32xf32>
    %cst_59 = arith.constant 5.000000e-01 : f32
    %175 = vector.broadcast %cst_59 : f32 to vector<8x32xf32>
    %176 = arith.mulf %175, %174 : vector<8x32xf32>
    %cst_60 = arith.constant 5.000000e-01 : f32
    %177 = vector.broadcast %cst_60 : f32 to vector<8x32xf32>
    %178 = arith.addf %176, %177 : vector<8x32xf32>
    %179 = vector.extract_strided_slice %168 {offsets = [0, 64], sizes = [8, 32], strides = [1, 1]} : vector<8x128xf32> to vector<8x32xf32>
    %180 = vector.extract_strided_slice %168 {offsets = [0, 96], sizes = [8, 32], strides = [1, 1]} : vector<8x128xf32> to vector<8x32xf32>
    %cst_61 = arith.constant 5.000000e-01 : f32
    %181 = vector.broadcast %cst_61 : f32 to vector<8x32xf32>
    %182 = arith.mulf %181, %180 : vector<8x32xf32>
    %cst_62 = arith.constant 5.000000e-01 : f32
    %183 = vector.broadcast %cst_62 : f32 to vector<8x32xf32>
    %184 = arith.addf %182, %183 : vector<8x32xf32>
    %185 = arith.mulf %178, %162 : vector<8x32xf32>
    %186 = arith.mulf %173, %179 : vector<8x32xf32>
    %187 = arith.addf %185, %186 : vector<8x32xf32>
    %188 = math.tanh %187 : vector<8x32xf32>
    %189 = arith.mulf %184, %188 : vector<8x32xf32>
    %190 = vector.extract_strided_slice %12 {offsets = [56, 0], sizes = [8, 128], strides = [1, 1]} : vector<64x128xf32> to vector<8x128xf32>
    %cst_63 = arith.constant dense<0.000000e+00> : vector<8x128xf32>
    %191 = tpu.matmul %189, %1, %cst_63 {dimension_numbers = #tpu.dot_dimension_numbers<[1], [0], [0], [1], [0, 0, 1, 1], [], []>} : vector<8x32xf32>, vector<32x128xf32>, vector<8x128xf32> -> vector<8x128xf32>
    %192 = arith.addf %190, %191 : vector<8x128xf32>
    %193 = math.tanh %192 : vector<8x128xf32>
    %194 = vector.extract_strided_slice %193 {offsets = [0, 0], sizes = [8, 32], strides = [1, 1]} : vector<8x128xf32> to vector<8x32xf32>
    %cst_64 = arith.constant 5.000000e-01 : f32
    %195 = vector.broadcast %cst_64 : f32 to vector<8x32xf32>
    %196 = arith.mulf %195, %194 : vector<8x32xf32>
    %cst_65 = arith.constant 5.000000e-01 : f32
    %197 = vector.broadcast %cst_65 : f32 to vector<8x32xf32>
    %198 = arith.addf %196, %197 : vector<8x32xf32>
    %199 = vector.extract_strided_slice %193 {offsets = [0, 32], sizes = [8, 32], strides = [1, 1]} : vector<8x128xf32> to vector<8x32xf32>
    %cst_66 = arith.constant 5.000000e-01 : f32
    %200 = vector.broadcast %cst_66 : f32 to vector<8x32xf32>
    %201 = arith.mulf %200, %199 : vector<8x32xf32>
    %cst_67 = arith.constant 5.000000e-01 : f32
    %202 = vector.broadcast %cst_67 : f32 to vector<8x32xf32>
    %203 = arith.addf %201, %202 : vector<8x32xf32>
    %204 = vector.extract_strided_slice %193 {offsets = [0, 64], sizes = [8, 32], strides = [1, 1]} : vector<8x128xf32> to vector<8x32xf32>
    %205 = vector.extract_strided_slice %193 {offsets = [0, 96], sizes = [8, 32], strides = [1, 1]} : vector<8x128xf32> to vector<8x32xf32>
    %cst_68 = arith.constant 5.000000e-01 : f32
    %206 = vector.broadcast %cst_68 : f32 to vector<8x32xf32>
    %207 = arith.mulf %206, %205 : vector<8x32xf32>
    %cst_69 = arith.constant 5.000000e-01 : f32
    %208 = vector.broadcast %cst_69 : f32 to vector<8x32xf32>
    %209 = arith.addf %207, %208 : vector<8x32xf32>
    %210 = arith.mulf %203, %187 : vector<8x32xf32>
    %211 = arith.mulf %198, %204 : vector<8x32xf32>
    %212 = arith.addf %210, %211 : vector<8x32xf32>
    %213 = math.tanh %212 : vector<8x32xf32>
    %214 = arith.mulf %209, %213 : vector<8x32xf32>
    %cst_70 = arith.constant dense<0.000000e+00> : vector<8x128xf32>
    %215 = tpu.matmul %214, %3, %cst_70 {dimension_numbers = #tpu.dot_dimension_numbers<[1], [0], [0], [1], [0, 0, 1, 1], [], []>} : vector<8x32xf32>, vector<32x128xf32>, vector<8x128xf32> -> vector<8x128xf32>
    %cst_71 = arith.constant dense<0.000000e+00> : vector<8x128xf32>
    %216 = tpu.matmul %9, %4, %cst_71 {dimension_numbers = #tpu.dot_dimension_numbers<[1], [0], [0], [1], [0, 0, 1, 1], [], []>} : vector<8x32xf32>, vector<32x128xf32>, vector<8x128xf32> -> vector<8x128xf32>
    %217 = arith.addf %215, %216 : vector<8x128xf32>
    %218 = vector.broadcast %5 : vector<1x128xf32> to vector<8x128xf32>
    %219 = arith.addf %217, %218 : vector<8x128xf32>
    %cst_72 = arith.constant 0.000000e+00 : f32
    %220 = vector.broadcast %cst_72 : f32 to vector<8x128xf32>
    %221 = arith.maximumf %219, %220 : vector<8x128xf32>
    %222 = vector.broadcast %6 : vector<1x128xf32> to vector<8x128xf32>
    %223 = arith.mulf %221, %222 : vector<8x128xf32>
    %cst_73 = arith.constant dense<0.000000e+00> : vector<8xf32>
    %224 = vector.multi_reduction <add>, %223, %cst_73 [1] : vector<8x128xf32> to vector<8xf32>
    %225 = vector.shape_cast %224 : vector<8xf32> to vector<8x1xf32>
    %226 = vector.broadcast %7 : vector<1x1xf32> to vector<8x1xf32>
    %227 = arith.addf %225, %226 : vector<8x1xf32>
    %c0_74 = arith.constant 0 : index
    %c0_75 = arith.constant 0 : index
    %228 = vector.load %arg2[%c0_74, %c0_75] : memref<8x1xf32, #tpu.memory_space<vmem>>, vector<8x1xf32>
    tpu.vector_store %arg2[%c0_74, %c0_75], %227 {strides = array<i32>} : memref<8x1xf32, #tpu.memory_space<vmem>>, vector<8x1xf32>,
    return
  }
}

</mosaic_0001>

<bundles_post_ra>
// kernel: tpu_custom_call.1
= control target key start
LH: loop header
LB: loop body
LE: loop exit
PB: predicated region body
PF: predicated region fallthrough
CT: control target
= control target key end

     0   :  { %7 = vsyncpa [#allocation3], 0  ;;  %s646_s12 = smov [#allocation2]   ;;  %s647_s14 = smov 128   ;;  %s808_s0 = inlined_call_operand.vmem [shape: f32[72,32], index: 0, kind: input, shape index: {}]   ;;  %s809_s1 = inlined_call_operand.hbm [shape: f32[160,128], index: 1, kind: input, shape index: {}]   ;;  %s810_s2 = inlined_call_operand.vmem [shape: f32[8,1], index: 2, kind: output, shape index: {}]  }
   0x1   :  { %s14_s11 = sshll.u32 %s809_s1, 4  ;;  %s16_s13 = sshll.u32 %s646_s12, 4  ;;  %s15_s11 = int_to_ptr.hbm [resolvable:$true] %s14_s11  ;;  %s17_s13 = int_to_ptr.vmem [resolvable:$true] %s16_s13 }
   0x2   :  { %s648_s15 = smov 8  }
   0x3   :  { %22 = dma.hbm_to_vmem [thread:$0]  %s15_s11, 2560, %s17_s13, [#allocation3], %s647_s14, %s647_s14, %s648_s15  }
   0x4   :  { %644 = dma.done.wait [#allocation3], 2560  }
   0x5   :  { %645 = vsyncadd [#allocation3], 4294964736  ;;  %v30_v0 = vld [vmem:[#allocation2 + $0x18] sm:$0xff]  ;;  %v29_v1 = vld [vmem:[#allocation2 + $0x10] sm:$0xff]  ;;  %vm57_vm0 = vcmask 261120   ;;  %v649_v9 = vmov 0.0  }
   0x6   :  { %v670_v2 = vld [vmem:[#allocation2 + $0x38] sm:$0xff]  ;;  %94 = vmatpush.msra.mxu0 %v30_v0  ;;  %v673_v3 = vld [vmem:[#allocation2 + $0x30] sm:$0xff]  ;;  %v28_v4 = vld [vmem:[#allocation2 + $0x8] sm:$0xff]  ;;  %570 = vmatpush.msra.mxu2 %v30_v0  ;;  %s650_s17 = smov 64   ;;  %s651_s18 = smov 32   ;;  %vm546_vm1 = vcmask 7168  }
   0x7   :  { %138 = vmatpush.msra.mxu1 %v670_v2  ;;  %v675_v5 = vld [vmem:[#allocation2 + $0x28] sm:$0xff]  ;;  %571 = vmatpush.msra.mxu3 %v30_v0  ;;  %v27_v6 = vld [vmem:[#allocation2] sm:$0xff]  ;;  %v53_v43 = vld [vmem:[%s808_s0 + $0x30] sm:$0xff] }
   0x8   :  { %95 = vmatpush.msra.mxu0 %v29_v1  ;;  %v678_v7 = vld [vmem:[#allocation2 + $0x20] sm:$0xff]  ;;  %572 = vmatpush.msra.mxu2 %v29_v1  ;;  %v52_v24 = vld [vmem:[%s808_s0 + $0x28] sm:$0xff]  ;;  %v54_v44 = vld [vmem:[%s808_s0 + $0x38] sm:$0xff] }
   0x9   :  { %139 = vmatpush.msra.mxu1 %v673_v3  ;;  %573 = vmatpush.msra.mxu3 %v29_v1  ;;  %v47_v8 = vld [vmem:[%s808_s0] sm:$0xff]  ;;  %v48_v27 = vld [vmem:[%s808_s0 + $0x8] sm:$0xff]  ;;  %v49_v47 = vld [vmem:[%s808_s0 + $0x10] sm:$0xff] }
   0xa   :  { %96 = vmatpush.msra.mxu0 %v28_v4  ;;  %574 = vmatpush.msra.mxu2 %v28_v4  ;;  %v702_v10 = vld [vmem:[#allocation2 + $0x40] ss:$0 sm:$0xff]  ;;  %v50_v0 = vld [vmem:[%s808_s0 + $0x18] sm:$0xff] }
   0xb   :  { %140 = vmatpush.msra.mxu1 %v675_v5  ;;  %575 = vmatpush.msra.mxu3 %v28_v4 }
   0xc   :  { %97 = vmatpush.msra.mxu0 %v27_v6  ;;  %576 = vmatpush.msra.mxu2 %v27_v6 }
   0xd   :  { %141 = vmatpush.msra.mxu1 %v678_v7  ;;  %553 = vmatmul.msk.f32.vlgmr.msra.gmra.mxu0 %vm57_vm0, %v47_v8 }
   0xe   :  { %142 = vmatmul.f32.vlgmr.msra.gmra.mxu1 %v649_v9  ;;  %577 = vmatpush.msra.mxu3 %v27_v6 }
   0xf   :  { %184 = vmatpush.msrb.mxu2 %v670_v2  ;;  %276 = vmatpush.msrb.mxu1 %v670_v2 }
  0x10   :  { %230 = vmatpush.msrb.mxu3 %v670_v2  ;;  %558 = vmatmul.msk.f32.vlgmr.msra.gmra.mxu2 %vm57_vm0, %v52_v24 }
  0x11   :  { %185 = vmatpush.msrb.mxu2 %v673_v3  ;;  %277 = vmatpush.msrb.mxu1 %v673_v3 }
  0x12   :  { %231 = vmatpush.msrb.mxu3 %v673_v3 }
  0x13   :  { %186 = vmatpush.msrb.mxu2 %v675_v5  ;;  %278 = vmatpush.msrb.mxu1 %v675_v5 }
  0x14   :  { %232 = vmatpush.msrb.mxu3 %v675_v5 }
  0x15   :  { %187 = vmatpush.msrb.mxu2 %v678_v7  ;;  %279 = vmatpush.msrb.mxu1 %v678_v7 }
  0x16   :  { %233 = vmatpush.msrb.mxu3 %v678_v7  ;;  %554 = vmatmul.msk.f32.gmra.mxu0 %vm57_vm0, %v48_v27 }
  0x17   :  { %414 = vmatpush.msra.mxu1 %v670_v2  ;;  %322 = vmatpush.msra.mxu2 %v670_v2 }
  0x18   :  { %559 = vmatmul.msk.f32.vlgmr.msra.gmra.mxu3 %vm57_vm0, %v53_v43 }
  0x19   :  { %415 = vmatpush.msra.mxu1 %v673_v3  ;;  %323 = vmatpush.msra.mxu2 %v673_v3 }
  0x1a   :  { %368 = vmatpush.msra.mxu3 %v670_v2 }
  0x1b   :  { %416 = vmatpush.msra.mxu1 %v675_v5  ;;  %324 = vmatpush.msra.mxu2 %v675_v5 }
  0x1c   :  { %369 = vmatpush.msra.mxu3 %v673_v3 }
  0x1d   :  { %417 = vmatpush.msra.mxu1 %v678_v7  ;;  %325 = vmatpush.msra.mxu2 %v678_v7 }
  0x1e   :  { %370 = vmatpush.msra.mxu3 %v675_v5  ;;  %555 = vmatmul.msk.f32.gmra.mxu0 %vm57_vm0, %v49_v47 }
  0x20   :  { %371 = vmatpush.msra.mxu3 %v678_v7 }
  0x21   :  { %560 = vmatmul.msk.f32.gmra.mxu3 %vm57_vm0, %v54_v44 }
  0x26   :  { %556 = vmatmul.msk.f32.gmra.mxu0 %vm57_vm0, %v50_v0 }
  0x8a   :  { %v99_v11 = vpop.f32.mrf.mxu0 }
  0x8b   :  { %v143_v12 = vpop.f32.mrf.mxu1  ;;  %v100_v13 = vadd.f32 %v702_v10, %v99_v11 }
  0x8d   :  { %v146_v14 = vadd.f32 %v143_v12, %v100_v13 }
  0x8f   :  { %588 = vtanh.f32 %v146_v14 }
  0x93   :  { %v726_v29 = vpop.f32.mrf.mxu2  ;;  %v102_v30 = vpop.f32.mrf.mxu0 }
  0x94   :  { %v103_v31 = vadd.f32 %v702_v10, %v102_v30 }
  0x95   :  { %v589_v15 = vpop.eup %588 }
  0x96   :  { %152 = vrot.lane.b32.xlu0 %v589_v15, %s650_s17  ;;  %v148_v16 = vmul.f32 0.5, %v589_v15 }
  0x98   :  { %v149_v17 = vadd.f32 0.5, %v148_v16 }
  0x9a   :  { %v150_v20 = vmul.f32 0.0, %v149_v17 }
  0x9b   :  { %v750_v49 = vpop.f32.mrf.mxu3  ;;  %v105_v51 = vpop.f32.mrf.mxu0 }
  0x9c   :  { %v106_v52 = vadd.f32 %v702_v10, %v105_v51 }
  0xa3   :  { %v108_v4 = vpop.f32.mrf.mxu0 }
  0xa4   :  { %v752_v50 = vpop.f32.mrf.mxu3 }
 0x108   :  { %v153_v18 = vpop.permute.xlu0 %152 }
 0x109   :  { %v155_v19 = vmul.f32 %v153_v18, %v149_v17 }
 0x10b   :  { %157 = vrot.lane.b32.xlu0 %v155_v19, %s651_s18 }
 0x17d   :  { %v158_v21 = vpop.permute.xlu0 %157 }
 0x17e   :  { %v160_v22 = vadd.f32 %v158_v21, %v150_v20  ;;  %v51_v20 = vld [vmem:[%s808_s0 + $0x20] sm:$0xff] }
 0x17f   :  { %557 = vmatmul.msk.f32.gmra.mxu0 %vm57_vm0, %v51_v20  ;;  %v38_v20 = vld [vmem:[#allocation2 + $0x58] sm:$0xff] }
 0x180   :  { %590 = vtanh.f32 %v160_v22 }
 0x186   :  { %v591_v23 = vpop.eup %590 }
 0x187   :  { %163 = vrot.lane.b32.xlu1 %v591_v23, %s650_s17 }
 0x1f9   :  { %v164_v25 = vpop.permute.xlu1 %163 }
 0x1fa   :  { %v166_v26 = vmul.f32 %v164_v25, %v149_v17 }
 0x1fc   :  { %168 = vrot.lane.b32.xlu1 %v166_v26, %s651_s18 }
 0x26e   :  { %v169_v28 = vpop.permute.xlu1 %168 }
 0x26f   :  { %561 = vmatmul.msk.f32.vlgmr.msrb.gmra.mxu2 %vm57_vm0, %v169_v28 }
 0x270   :  { %460 = vmatpush.msrb.mxu2 %v670_v2 }
 0x272   :  { %461 = vmatpush.msrb.mxu2 %v673_v3 }
 0x274   :  { %462 = vmatpush.msrb.mxu2 %v675_v5  ;;  %v109_v5 = vadd.f32 %v702_v10, %v108_v4 }
 0x276   :  { %463 = vmatpush.msrb.mxu2 %v678_v7 }
 0x2f2   :  { %v189_v32 = vpop.f32.mrf.mxu2 }
 0x2f3   :  { %v192_v33 = vadd.f32 %v189_v32, %v103_v31 }
 0x2f5   :  { %592 = vtanh.f32 %v192_v33 }
 0x2fb   :  { %v593_v34 = vpop.eup %592 }
 0x2fc   :  { %198 = vrot.lane.b32.xlu2 %v593_v34, %s650_s17  ;;  %v194_v35 = vmul.f32 0.5, %v593_v34 }
 0x2fe   :  { %v195_v36 = vadd.f32 0.5, %v194_v35 }
 0x300   :  { %v196_v39 = vmul.f32 %v195_v36, %v160_v22  ;;  %v111_v22 = vpop.f32.mrf.mxu0 }
 0x301   :  { %v112_v23 = vadd.f32 %v702_v10, %v111_v22  ;;  %v40_v22 = vld [vmem:[#allocation2 + $0x68] sm:$0xff] }
 0x356   :  { %v199_v37 = vpop.permute.xlu2 %198 }
 0x357   :  { %v201_v38 = vmul.f32 %v199_v37, %v195_v36 }
 0x359   :  { %203 = vrot.lane.b32.xlu2 %v201_v38, %s651_s18 }
 0x3b3   :  { %v204_v40 = vpop.permute.xlu2 %203 }
 0x3b4   :  { %v206_v41 = vadd.f32 %v204_v40, %v196_v39  ;;  %v115_v39 = vadd.f32 %v702_v10, %v726_v29 }
 0x3b6   :  { %594 = vtanh.f32 %v206_v41 }
 0x3bc   :  { %v595_v42 = vpop.eup %594 }
 0x3bd   :  { %209 = vrot.lane.b32.xlu0 %v595_v42, %s650_s17 }
 0x42f   :  { %v210_v45 = vpop.permute.xlu0 %209 }
 0x430   :  { %v212_v46 = vmul.f32 %v210_v45, %v195_v36 }
 0x432   :  { %214 = vrot.lane.b32.xlu1 %v212_v46, %s651_s18 }
 0x4a4   :  { %v215_v48 = vpop.permute.xlu1 %214 }
 0x4a5   :  { %562 = vmatmul.msk.f32.vlgmr.msrb.gmra.mxu3 %vm57_vm0, %v215_v48 }
 0x528   :  { %v235_v53 = vpop.f32.mrf.mxu3 }
 0x529   :  { %v238_v54 = vadd.f32 %v235_v53, %v106_v52 }
 0x52b   :  { %596 = vtanh.f32 %v238_v54 }
 0x531   :  { %v597_v55 = vpop.eup %596 }
 0x532   :  { %244 = vrot.lane.b32.xlu2 %v597_v55, %s650_s17  ;;  %v240_v56 = vmul.f32 0.5, %v597_v55  ;;  %v118_v55 = vadd.f32 %v702_v10, %v750_v49 }
 0x534   :  { %v241_v57 = vadd.f32 0.5, %v240_v56 }
 0x536   :  { %v242_v60 = vmul.f32 %v241_v57, %v206_v41 }
 0x58c   :  { %v245_v58 = vpop.permute.xlu2 %244 }
 0x58d   :  { %v247_v59 = vmul.f32 %v245_v58, %v241_v57 }
 0x58f   :  { %249 = vrot.lane.b32.xlu0 %v247_v59, %s651_s18 }
 0x601   :  { %v250_v61 = vpop.permute.xlu0 %249 }
 0x602   :  { %v252_v62 = vadd.f32 %v250_v61, %v242_v60 }
 0x604   :  { %598 = vtanh.f32 %v252_v62 }
 0x60a   :  { %v599_v63 = vpop.eup %598 }
 0x60b   :  { %255 = vrot.lane.b32.xlu1 %v599_v63, %s650_s17 }
 0x67d   :  { %v256_v1 = vpop.permute.xlu1 %255 }
 0x67e   :  { %v258_v2 = vmul.f32 %v256_v1, %v241_v57 }
 0x680   :  { %260 = vrot.lane.b32.xlu2 %v258_v2, %s651_s18 }
 0x6da   :  { %v261_v3 = vpop.permute.xlu2 %260 }
 0x6db   :  { %563 = vmatmul.msk.f32.vlgmr.msrb.gmra.mxu1 %vm57_vm0, %v261_v3 }
 0x758   :  { %v281_v6 = vpop.f32.mrf.mxu1 }
 0x759   :  { %v284_v7 = vadd.f32 %v281_v6, %v109_v5  ;;  %v121_v5 = vadd.f32 %v702_v10, %v752_v50  ;;  %v43_v10 = vld [vmem:[#allocation2 + $0x80] sm:$0xff]  ;;  %v42_v50 = vld [vmem:[#allocation2 + $0x78] sm:$0xff] }
 0x75a   :  { %504 = vmatpush.msrb.mxu3 %v43_v10 }
 0x75b   :  { %600 = vtanh.f32 %v284_v7 }
 0x75c   :  { %505 = vmatpush.msrb.mxu3 %v42_v50 }
 0x761   :  { %v601_v8 = vpop.eup %600 }
 0x762   :  { %290 = vrot.lane.b32.xlu0 %v601_v8, %s650_s17  ;;  %v286_v9 = vmul.f32 0.5, %v601_v8 }
 0x764   :  { %v287_v11 = vadd.f32 0.5, %v286_v9 }
 0x766   :  { %v288_v14 = vmul.f32 %v287_v11, %v252_v62 }
 0x7d4   :  { %v291_v12 = vpop.permute.xlu0 %290 }
 0x7d5   :  { %v293_v13 = vmul.f32 %v291_v12, %v287_v11 }
 0x7d7   :  { %295 = vrot.lane.b32.xlu1 %v293_v13, %s651_s18 }
 0x849   :  { %v296_v15 = vpop.permute.xlu1 %295 }
 0x84a   :  { %v298_v16 = vadd.f32 %v296_v15, %v288_v14 }
 0x84c   :  { %602 = vtanh.f32 %v298_v16 }
 0x852   :  { %v603_v17 = vpop.eup %602 }
 0x853   :  { %301 = vrot.lane.b32.xlu2 %v603_v17, %s650_s17 }
 0x8ad   :  { %v302_v18 = vpop.permute.xlu2 %301 }
 0x8ae   :  { %v304_v19 = vmul.f32 %v302_v18, %v287_v11  ;;  %v39_v18 = vld [vmem:[#allocation2 + $0x60] sm:$0xff] }
 0x8af   :  { %529 = vmatpush.msrb.mxu1 %v39_v18 }
 0x8b0   :  { %306 = vrot.lane.b32.xlu0 %v304_v19, %s651_s18  ;;  %v41_v19 = vld [vmem:[#allocation2 + $0x70] sm:$0xff] }
 0x8b1   :  { %530 = vmatpush.msrb.mxu1 %v38_v20  ;;  %506 = vmatpush.msrb.mxu3 %v41_v19 }
 0x8b3   :  { %507 = vmatpush.msrb.mxu3 %v40_v22 }
 0x922   :  { %v307_v21 = vpop.permute.xlu0 %306 }
 0x923   :  { %564 = vmatmul.msk.f32.vlgmr.msra.gmra.mxu2 %vm57_vm0, %v307_v21  ;;  %v37_v21 = vld [vmem:[#allocation2 + $0x50] sm:$0xff] }
 0x924   :  { %531 = vmatpush.msrb.mxu1 %v37_v21 }
 0x9a6   :  { %v327_v24 = vpop.f32.mrf.mxu2 }
 0x9a7   :  { %v330_v25 = vadd.f32 %v327_v24, %v112_v23  ;;  %v55_v23 = vld [vmem:[%s808_s0 + $0x40] sm:$0xff]  ;;  %v36_v24 = vld [vmem:[#allocation2 + $0x48] sm:$0xff] }
 0x9a8   :  { %532 = vmatpush.msrb.mxu1 %v36_v24 }
 0x9a9   :  { %604 = vtanh.f32 %v330_v25 }
 0x9af   :  { %v605_v26 = vpop.eup %604 }
 0x9b0   :  { %336 = vrot.lane.b32.xlu1 %v605_v26, %s650_s17  ;;  %v332_v27 = vmul.f32 0.5, %v605_v26 }
 0x9b2   :  { %v333_v28 = vadd.f32 0.5, %v332_v27 }
 0x9b4   :  { %v334_v32 = vmul.f32 %v333_v28, %v298_v16 }
 0xa22   :  { %v337_v30 = vpop.permute.xlu1 %336 }
 0xa23   :  { %v339_v31 = vmul.f32 %v337_v30, %v333_v28  ;;  %v585_v30 = vld [vmem:[#allocation2 + $0x88] ss:$0 sm:$0xff] }
 0xa25   :  { %341 = vrot.lane.b32.xlu2 %v339_v31, %s651_s18 }
 0xa7f   :  { %v342_v33 = vpop.permute.xlu2 %341 }
 0xa80   :  { %v344_v34 = vadd.f32 %v342_v33, %v334_v32 }
 0xa82   :  { %606 = vtanh.f32 %v344_v34 }
 0xa88   :  { %v607_v35 = vpop.eup %606 }
 0xa89   :  { %347 = vrot.lane.b32.xlu0 %v607_v35, %s650_s17 }
 0xafb   :  { %v348_v36 = vpop.permute.xlu0 %347 }
 0xafc   :  { %v350_v37 = vmul.f32 %v348_v36, %v333_v28 }
 0xafe   :  { %352 = vrot.lane.b32.xlu1 %v350_v37, %s651_s18  ;;  %v587_v37 = vld [vmem:[#allocation2 + $0x98] ss:$0 sm:$0xff] }
 0xb70   :  { %v353_v38 = vpop.permute.xlu1 %352 }
 0xb71   :  { %565 = vmatmul.msk.f32.vlgmr.msra.gmra.mxu3 %vm57_vm0, %v353_v38 }
 0xb79   :  { %568 = vmatmul.msk.f32.vlgmr.msrb.gmra.mxu3 %vm57_vm0, %v55_v23 }
 0xbf4   :  { %v373_v40 = vpop.f32.mrf.mxu3 }
 0xbf5   :  { %v376_v41 = vadd.f32 %v373_v40, %v115_v39 }
 0xbf7   :  { %608 = vtanh.f32 %v376_v41 }
 0xbfc   :  { %v509_v28 = vpop.f32.mrf.mxu3 }
 0xbfd   :  { %v609_v42 = vpop.eup %608 }
 0xbfe   :  { %382 = vrot.lane.b32.xlu2 %v609_v42, %s650_s17  ;;  %v378_v43 = vmul.f32 0.5, %v609_v42 }
 0xc00   :  { %v379_v44 = vadd.f32 0.5, %v378_v43 }
 0xc02   :  { %v380_v47 = vmul.f32 %v379_v44, %v344_v34  ;;  %v586_v34 = vld [vmem:[#allocation2 + $0x90] ss:$0 sm:$0xff] }
 0xc58   :  { %v383_v45 = vpop.permute.xlu2 %382 }
 0xc59   :  { %v385_v46 = vmul.f32 %v383_v45, %v379_v44 }
 0xc5b   :  { %387 = vrot.lane.b32.xlu0 %v385_v46, %s651_s18 }
 0xccd   :  { %v388_v48 = vpop.permute.xlu0 %387 }
 0xcce   :  { %v390_v51 = vadd.f32 %v388_v48, %v380_v47 }
 0xcd0   :  { %610 = vtanh.f32 %v390_v51 }
 0xcd6   :  { %v611_v52 = vpop.eup %610 }
 0xcd7   :  { %393 = vrot.lane.b32.xlu1 %v611_v52, %s650_s17 }
 0xd49   :  { %v394_v29 = vpop.permute.xlu1 %393 }
 0xd4a   :  { %v396_v53 = vmul.f32 %v394_v29, %v379_v44 }
 0xd4c   :  { %398 = vrot.lane.b32.xlu2 %v396_v53, %s651_s18 }
 0xda6   :  { %v399_v54 = vpop.permute.xlu2 %398 }
 0xda7   :  { %566 = vmatmul.msk.f32.vlgmr.msra.gmra.mxu1 %vm57_vm0, %v399_v54 }
 0xe24   :  { %v419_v56 = vpop.f32.mrf.mxu1 }
 0xe25   :  { %v422_v57 = vadd.f32 %v419_v56, %v118_v55 }
 0xe27   :  { %612 = vtanh.f32 %v422_v57 }
 0xe2d   :  { %v613_v58 = vpop.eup %612 }
 0xe2e   :  { %428 = vrot.lane.b32.xlu0 %v613_v58, %s650_s17  ;;  %v424_v59 = vmul.f32 0.5, %v613_v58 }
 0xe30   :  { %v425_v60 = vadd.f32 0.5, %v424_v59 }
 0xe32   :  { %v426_v63 = vmul.f32 %v425_v60, %v390_v51 }
 0xea0   :  { %v429_v61 = vpop.permute.xlu0 %428 }
 0xea1   :  { %v431_v62 = vmul.f32 %v429_v61, %v425_v60 }
 0xea3   :  { %433 = vrot.lane.b32.xlu1 %v431_v62, %s651_s18 }
 0xf15   :  { %v434_v0 = vpop.permute.xlu1 %433 }
 0xf16   :  { %v436_v1 = vadd.f32 %v434_v0, %v426_v63 }
 0xf18   :  { %614 = vtanh.f32 %v436_v1 }
 0xf1e   :  { %v615_v2 = vpop.eup %614 }
 0xf1f   :  { %439 = vrot.lane.b32.xlu2 %v615_v2, %s650_s17 }
 0xf79   :  { %v440_v49 = vpop.permute.xlu2 %439 }
 0xf7a   :  { %v442_v3 = vmul.f32 %v440_v49, %v425_v60 }
 0xf7c   :  { %444 = vrot.lane.b32.xlu0 %v442_v3, %s651_s18 }
 0xfee   :  { %v445_v4 = vpop.permute.xlu0 %444 }
 0xfef   :  { %567 = vmatmul.msk.f32.vlgmr.msrb.gmra.mxu2 %vm57_vm0, %v445_v4 }
0x1072   :  { %v465_v6 = vpop.f32.mrf.mxu2 }
0x1073   :  { %v468_v7 = vadd.f32 %v465_v6, %v121_v5 }
0x1075   :  { %616 = vtanh.f32 %v468_v7 }
0x107b   :  { %v617_v8 = vpop.eup %616 }
0x107c   :  { %474 = vrot.lane.b32.xlu1 %v617_v8, %s650_s17  ;;  %v470_v9 = vmul.f32 0.5, %v617_v8 }
0x107e   :  { %v471_v11 = vadd.f32 0.5, %v470_v9 }
0x1080   :  { %v472_v14 = vmul.f32 %v471_v11, %v436_v1 }
0x10ee   :  { %v475_v12 = vpop.permute.xlu1 %474 }
0x10ef   :  { %v477_v13 = vmul.f32 %v475_v12, %v471_v11 }
0x10f1   :  { %479 = vrot.lane.b32.xlu2 %v477_v13, %s651_s18 }
0x114b   :  { %v480_v15 = vpop.permute.xlu2 %479 }
0x114c   :  { %v482_v16 = vadd.f32 %v480_v15, %v472_v14 }
0x114e   :  { %618 = vtanh.f32 %v482_v16 }
0x1154   :  { %v619_v17 = vpop.eup %618 }
0x1155   :  { %485 = vrot.lane.b32.xlu0 %v619_v17, %s650_s17 }
0x11c7   :  { %v486_v25 = vpop.permute.xlu0 %485 }
0x11c8   :  { %v488_v26 = vmul.f32 %v486_v25, %v471_v11 }
0x11ca   :  { %513 = vrot.lane.b32.xlu1 %v488_v26, %s651_s18 }
0x123c   :  { %v514_v27 = vpop.permute.xlu1 %513 }
0x123d   :  { %569 = vmatmul.msk.f32.vlgmr.msrb.gmra.mxu1 %vm57_vm0, %v514_v27 }
0x12ba   :  { %v534_v31 = vpop.f32.mrf.mxu1 }
0x12bb   :  { %v535_v32 = vadd.f32 %v534_v31, %v509_v28 }
0x12bd   :  { %v538_v33 = vadd.f32 %v585_v30, %v535_v32 }
0x12bf   :  { %v539_v35 = vmax.f32 %v538_v33, 0.0 }
0x12c1   :  { %v541_v36 = vmul.f32 %v586_v34, %v539_v35 }
0x12c3   :  { %542 = vadd.xlane.f32.xlu2 %v541_v36 }
0x1336   :  { %v543_v38 = vpop.xlane.xlu2 %542 }
0x1337   :  { %v545_v39 = vadd.f32 %v587_v37, %v543_v38 }
0x1339   :  { %547 = vst.msk [vmem:[%s810_s2] sm:$0xff] %vm546_vm1, %v545_v39 }
0x133a   :  { %552 = vsyncpa [#allocation3], 1 }

</bundles_post_ra>
